<compile_context>
chip_gen: v5e
topology: v5e:2x2
jax: 0.10.0
libtpu: 0.0.40
codegen_flags: <defaults>
</compile_context>

<pallas_src>
import functools

import jax
import jax.numpy as jnp
from jax import lax
from jax.experimental import pallas as pl
from jax.experimental.pallas import tpu as pltpu


def _round_up(x, m):
    return (x + m - 1) // m * m


def _mosaic_params(semantics, est_bytes):
    # Generous but capped scoped-VMEM limit: >= the default on every
    # generation for small problems, scales with the block footprint for big
    # ones, never asks for more than is sane on v7x-class parts.
    limit = int(min(max(2 * int(est_bytes) + (4 << 20), 32 << 20), 100 << 20))
    return pltpu.CompilerParams(dimension_semantics=semantics,
                                vmem_limit_bytes=limit)


# ---------------------------------------------------------------------------
# Kernel 1: G = Z^T Z accumulated over row tiles (reduction axis "arbitrary").
# ---------------------------------------------------------------------------
def _gram_kernel(x_ref, g_ref):
    x = x_ref[...].astype(jnp.float32)                                # (tc, d)
    z = x * lax.rsqrt(jnp.maximum(jnp.sum(x * x, axis=1, keepdims=True), 1e-24))
    g = lax.dot_general(z, z, (((0,), (0,)), ((), ())),
                        preferred_element_type=jnp.float32)           # (d, d)

    @pl.when(pl.program_id(0) == 0)
    def _():
        g_ref[...] = jnp.zeros_like(g_ref)

    g_ref[...] += g


# ---------------------------------------------------------------------------
# Kernel 2: emit A (anchor operand) and lane-dense, chunked B^T.
# ---------------------------------------------------------------------------
def _prep_kernel(x_ref, g_ref, a_ref, bt_ref, *, inv_temp):
    x = x_ref[...].astype(jnp.float32)                                # (tc, d)
    z = x * lax.rsqrt(jnp.maximum(jnp.sum(x * x, axis=1, keepdims=True), 1e-24))
    h = jnp.dot(z, g_ref[...], preferred_element_type=jnp.float32)    # (tc, d)
    s = jnp.sum(h * z, axis=1, keepdims=True)                         # (tc, 1)
    inv = lax.rsqrt(jnp.maximum(s, 1e-24))
    a_ref[...] = h * (inv * inv_temp)                                 # (tc, d)
    bt_ref[...] = jnp.transpose(z * inv)[None, :, :]                  # (1, d, tc)


# ---------------------------------------------------------------------------
# Kernel 3: per anchor row tile, two-phase column-chunked masked LSE.
# ---------------------------------------------------------------------------
def _loss_kernel(a_ref, bt_ref, labr_ref, labc_ref, tot_ref, cnt_ref, *,
                 inv_temp, n_valid):
    i = pl.program_id(0)
    a = a_ref[...]                                                    # (tm, d)
    tm = a.shape[0]
    n_chunks, _, tn = bt_ref.shape
    n_pad = n_chunks * tn
    padded = n_valid < n_pad            # static python bool -> mask ops vanish
    c = inv_temp                        # static row max: sims_ii == 1/T

    lab_a = labr_ref[...]                                             # (tm, 1)
    row_g = lax.broadcasted_iota(jnp.int32, (tm, tn), 0) + i * tm
    col_l = lax.broadcasted_iota(jnp.int32, (tm, tn), 1)

    # Phase 1: denominators  sneg_i = sum_{k in neg(i)} exp(sims_ik - c).
    def phase1(k, sneg):
        sims = jnp.dot(a, bt_ref[k], preferred_element_type=jnp.float32)
        e = jnp.exp(sims - c)
        neg = lab_a != labc_ref[k]
        if padded:
            neg = neg & (col_l + k * tn < n_valid)
        return sneg + jnp.sum(jnp.where(neg, e, 0.0), axis=1, keepdims=True)

    sneg = lax.fori_loop(0, n_chunks, phase1, jnp.zeros((tm, 1), jnp.float32))

    # Phase 2: per positive pair, log(sneg_i + exp(sims_ij - c)) - sims_ij.
    # (The "+ c" term is folded out; the wrapper adds c * num_pairs back.)
    def phase2(k, carry):
        tot, cnt = carry
        sims = jnp.dot(a, bt_ref[k], preferred_element_type=jnp.float32)
        e = jnp.exp(sims - c)
        col_g = col_l + k * tn
        pos = (lab_a == labc_ref[k]) & (row_g != col_g)
        if padded:
            pos = pos & (col_g < n_valid)
        per_pair = jnp.log(sneg + e) - sims
        tot = tot + jnp.sum(jnp.where(pos, per_pair, 0.0), keepdims=True)
        cnt = cnt + jnp.sum(pos.astype(jnp.float32), keepdims=True)
        return tot, cnt

    tot, cnt = lax.fori_loop(0, n_chunks, phase2,
                             (jnp.zeros((1, 1), jnp.float32),
                              jnp.zeros((1, 1), jnp.float32)))

    # Lane-dense per-tile partial outputs (wrapper reads [:, 0, 0]).
    tot_ref[...] = jnp.broadcast_to(tot, tot_ref.shape)
    cnt_ref[...] = jnp.broadcast_to(cnt, cnt_ref.shape)


# ---------------------------------------------------------------------------
# Wrapper
# ---------------------------------------------------------------------------
def sup_con_loss(feature_vectors, labels, temperature=0.1, tile_rows=128):
    """Pallas implementation of SupConLoss.forward."""
    feats = jnp.asarray(feature_vectors, jnp.float32)
    n, d = feats.shape
    lab = jnp.reshape(jnp.asarray(labels), (-1,)).astype(jnp.int32)   # squeeze
    inv_temp = 1.0 / float(temperature)

    # Columns padded to a lane multiple, independent of the anchor row tile
    # (at most one junk 128-wide chunk).
    n_pad = _round_up(max(n, 1), 128)
    tc = next(cc for cc in (512, 256, 128) if n_pad % cc == 0)   # column chunk
    n_chunks = n_pad // tc

    # Anchor row tile: <= tile_rows, small enough that >= 2 tiles exist
    # (feeds v7x's second TensorCore); must divide n_pad and be a multiple of 8.
    cand = min(max(8, _round_up(int(tile_rows), 8)),
               max(8, _round_up(-(-n_pad // 2), 8)))
    tm = 8
    for t in range(cand, 7, -8):
        if n_pad % t == 0:
            tm = t
            break
    num_row_tiles = n_pad // tm

    if n_pad != n:
        feats = jnp.pad(feats, ((0, n_pad - n), (0, 0)))
        lab = jnp.pad(lab, (0, n_pad - n), constant_values=-1)

    # ---- kernel 1: Gram accumulation ---------------------------------------
    est1 = 2 * tc * d * 4 + 2 * d * d * 4 + 6 * tc * d * 4
    gram = pl.pallas_call(
        _gram_kernel,
        grid=(n_chunks,),
        in_specs=[pl.BlockSpec((tc, d), lambda i: (i, 0))],
        out_specs=pl.BlockSpec((d, d), lambda i: (0, 0)),
        out_shape=jax.ShapeDtypeStruct((d, d), jnp.float32),
        compiler_params=_mosaic_params(("arbitrary",), est1),
    )
    g_mat = gram(feats)

    # ---- kernel 2: emit A and chunked, pre-transposed B --------------------
    est2 = 6 * tc * d * 4 + 2 * d * d * 4 + 6 * tc * d * 4
    prep = pl.pallas_call(
        functools.partial(_prep_kernel, inv_temp=inv_temp),
        grid=(n_chunks,),
        in_specs=[pl.BlockSpec((tc, d), lambda i: (i, 0)),
                  pl.BlockSpec((d, d), lambda i: (0, 0))],
        out_specs=(pl.BlockSpec((tc, d), lambda i: (i, 0)),
                   pl.BlockSpec((1, d, tc), lambda i: (i, 0, 0))),
        out_shape=(jax.ShapeDtypeStruct((n_pad, d), jnp.float32),
                   jax.ShapeDtypeStruct((n_chunks, d, tc), jnp.float32)),
        compiler_params=_mosaic_params(("parallel",), est2),
    )
    a_mat, bt_mat = prep(feats, g_mat)

    # ---- kernel 3: row-tiled, column-chunked two-phase masked LSE ----------
    lab_anchor = lab.reshape(n_pad, 1)            # labels per anchor row
    lab_chunks = lab.reshape(n_chunks, 1, tc)     # labels per column, chunked
    est3 = (2 * tm * d * 4 + 2 * n_pad * d * 4 + 2 * n_pad * 4 + 2 * tm * 4
            + 10 * tm * tc * 4 + 4 * 8 * 128 * 4)
    loss_call = pl.pallas_call(
        functools.partial(_loss_kernel, inv_temp=inv_temp, n_valid=n),
        grid=(num_row_tiles,),
        in_specs=[
            pl.BlockSpec((tm, d), lambda i: (i, 0)),               # A row tile
            pl.BlockSpec((n_chunks, d, tc), lambda i: (0, 0, 0)),  # B^T resident
            pl.BlockSpec((tm, 1), lambda i: (i, 0)),               # anchor labels
            pl.BlockSpec((n_chunks, 1, tc), lambda i: (0, 0, 0)),  # column labels
        ],
        out_specs=(pl.BlockSpec((1, 8, 128), lambda i: (i, 0, 0)),
                   pl.BlockSpec((1, 8, 128), lambda i: (i, 0, 0))),
        out_shape=(jax.ShapeDtypeStruct((num_row_tiles, 8, 128), jnp.float32),
                   jax.ShapeDtypeStruct((num_row_tiles, 8, 128), jnp.float32)),
        compiler_params=_mosaic_params(("parallel",), est3),
    )
    tot, cnt = loss_call(a_mat, bt_mat, lab_anchor, lab_chunks)

    total = jnp.sum(tot[:, 0, 0])
    npos = jnp.sum(cnt[:, 0, 0])
    # Fold the static shift c = 1/T back into the per-pair sum; MeanReducer.
    loss = (total + inv_temp * npos) / jnp.maximum(npos, 1.0)
    return jnp.where(npos > 0, loss, 0.0)


# ---------------------------------------------------------------------------
# Pure-JAX reference with the original module's semantics (sanity check).
# ---------------------------------------------------------------------------
_NEG_BIG = -1e30


def _reference_sup_con_loss(feature_vectors, labels, temperature=0.1):
    x = jnp.asarray(feature_vectors, jnp.float32)
    lab = jnp.reshape(jnp.asarray(labels), (-1,)).astype(jnp.int32)
    n = x.shape[0]
    z = x / jnp.maximum(jnp.linalg.norm(x, axis=1, keepdims=True), 1e-12)
    logits = (z @ z.T) / temperature
    m = logits / jnp.maximum(jnp.linalg.norm(logits, axis=1, keepdims=True), 1e-12)
    sims = (m @ m.T) / temperature
    same = lab[:, None] == lab[None, :]
    diag = jnp.eye(n, dtype=bool)
    pos_mask = same & ~diag
    neg_mask = ~same
    neg_vals = jnp.where(neg_mask, sims, _NEG_BIG)
    neg_max = jnp.max(neg_vals, axis=1, keepdims=True)
    sum_exp_neg = jnp.sum(jnp.where(neg_mask, jnp.exp(neg_vals - neg_max), 0.0),
                          axis=1, keepdims=True)
    max_val = jnp.maximum(sims, neg_max)
    numer = jnp.exp(sims - max_val)
    denom = jnp.exp(neg_max - max_val) * sum_exp_neg + numer
    per_pair = -jnp.log(numer / denom)
    total = jnp.sum(jnp.where(pos_mask, per_pair, 0.0))
    npos = jnp.sum(pos_mask.astype(jnp.float32))
    return jnp.where(npos > 0, total / jnp.maximum(npos, 1.0), 0.0)


if __name__ == "__main__":
    key = jax.random.PRNGKey(0)
    kf, kl = jax.random.split(key)

    # Case 1: typical small batch.
    N, D = 16, 128
    fv = jax.random.normal(kf, (N, D), dtype=jnp.float32)
    lb = jax.random.randint(kl, (N, 1), 0, 4, dtype=jnp.int32)
    out = jax.block_until_ready(sup_con_loss(fv, lb, temperature=0.1))
    ref = _reference_sup_con_loss(fv, lb, temperature=0.1)
    assert jnp.isfinite(out), out
    assert jnp.allclose(out, ref, rtol=2e-4, atol=2e-4), (out, ref)

    # Case 2: N not a multiple of anything nice + tiny row tile -> many tiles.
    fv2 = jax.random.normal(jax.random.PRNGKey(7), (40, D), dtype=jnp.float32)
    lb2 = jax.random.randint(jax.random.PRNGKey(8), (40, 1), 0, 5, dtype=jnp.int32)
    out2 = jax.block_until_ready(sup_con_loss(fv2, lb2, temperature=0.1,
                                              tile_rows=16))
    ref2 = _reference_sup_con_loss(fv2, lb2, temperature=0.1)
    assert jnp.isfinite(out2), out2
    assert jnp.allclose(out2, ref2, rtol=2e-4, atol=2e-4), (out2, ref2)

    # Case 3: no column padding (N multiple of 128) -> mask-free static path.
    fv3 = jax.random.normal(jax.random.PRNGKey(11), (128, 64), dtype=jnp.float32)
    lb3 = jax.random.randint(jax.random.PRNGKey(12), (128, 1), 0, 6, dtype=jnp.int32)
    out3 = jax.block_until_ready(sup_con_loss(fv3, lb3, temperature=0.1))
    ref3 = _reference_sup_con_loss(fv3, lb3, temperature=0.1)
    assert jnp.isfinite(out3), out3
    assert jnp.allclose(out3, ref3, rtol=2e-4, atol=2e-4), (out3, ref3)

    # Case 4: several column chunks + several row tiles + padding.
    fv4 = jax.random.normal(jax.random.PRNGKey(21), (272, 32), dtype=jnp.float32)
    lb4 = jax.random.randint(jax.random.PRNGKey(22), (272, 1), 0, 7, dtype=jnp.int32)
    out4 = jax.block_until_ready(sup_con_loss(fv4, lb4, temperature=0.1))
    ref4 = _reference_sup_con_loss(fv4, lb4, temperature=0.1)
    assert jnp.isfinite(out4), out4
    assert jnp.allclose(out4, ref4, rtol=2e-4, atol=2e-4), (out4, ref4)

    print("KERNEL_OK")
</pallas_src>

<mosaic_0001>
module attributes {stable_mosaic.version = 11 : i64} {
  func.func @_gram_kernel(%arg0: i32, %arg1: memref<128x128xf32, #tpu.memory_space<vmem>>, %arg2: memref<128x128xf32, #tpu.memory_space<vmem>>) attributes {dimension_semantics = [#tpu.dimension_semantics<arbitrary>], iteration_bounds = array<i64: 1>, scalar_prefetch = 0 : i64, scratch_operands = 0 : i64, tpu.core_type = #tpu.core_type<tc>, window_params = [{transform_indices = @transform_0, window_bounds = array<i64: 128, 128>}, {pipeline_mode = #tpu.pipeline_mode<synchronous>, transform_indices = @transform_1, window_bounds = array<i64: 128, 128>}]} {
    %c0 = arith.constant 0 : index
    %c0_0 = arith.constant 0 : index
    %0 = vector.load %arg1[%c0, %c0_0] : memref<128x128xf32, #tpu.memory_space<vmem>>, vector<128x128xf32>
    %1 = arith.mulf %0, %0 : vector<128x128xf32>
    %cst = arith.constant dense<0.000000e+00> : vector<128xf32>
    %2 = vector.multi_reduction <add>, %1, %cst [1] : vector<128x128xf32> to vector<128xf32>
    %3 = vector.shape_cast %2 : vector<128xf32> to vector<128x1xf32>
    %cst_1 = arith.constant 1.000000e-24 : f32
    %4 = vector.broadcast %cst_1 : f32 to vector<128x1xf32>
    %5 = arith.maximumf %3, %4 : vector<128x1xf32>
    %6 = math.rsqrt %5 : vector<128x1xf32>
    %7 = vector.broadcast %6 : vector<128x1xf32> to vector<128x128xf32>
    %8 = arith.mulf %0, %7 : vector<128x128xf32>
    %cst_2 = arith.constant dense<0.000000e+00> : vector<128x128xf32>
    %9 = tpu.matmul %8, %8, %cst_2 {dimension_numbers = #tpu.dot_dimension_numbers<[0], [0], [1], [1], [0, 1, 1, 1], [], []>} : vector<128x128xf32>, vector<128x128xf32>, vector<128x128xf32> -> vector<128x128xf32>
    %c0_i32 = arith.constant 0 : i32
    %10 = arith.cmpi eq, %arg0, %c0_i32 : i32
    %11 = arith.extui %10 : i1 to i32
    %c0_i32_3 = arith.constant 0 : i32
    %12 = arith.cmpi ne, %11, %c0_i32_3 : i32
    scf.if %12 {
      %cst_8 = arith.constant 0.000000e+00 : f32
      %16 = vector.broadcast %cst_8 : f32 to vector<128x128xf32>
      %c0_9 = arith.constant 0 : index
      %c0_10 = arith.constant 0 : index
      %17 = vector.load %arg2[%c0_9, %c0_10] : memref<128x128xf32, #tpu.memory_space<vmem>>, vector<128x128xf32>
      tpu.vector_store %arg2[%c0_9, %c0_10], %16 {strides = array<i32>} : memref<128x128xf32, #tpu.memory_space<vmem>>, vector<128x128xf32>,
    } else {
    }
    %c0_4 = arith.constant 0 : index
    %c0_5 = arith.constant 0 : index
    %13 = vector.load %arg2[%c0_4, %c0_5] : memref<128x128xf32, #tpu.memory_space<vmem>>, vector<128x128xf32>
    %14 = arith.addf %13, %9 : vector<128x128xf32>
    %c0_6 = arith.constant 0 : index
    %c0_7 = arith.constant 0 : index
    %15 = vector.load %arg2[%c0_6, %c0_7] : memref<128x128xf32, #tpu.memory_space<vmem>>, vector<128x128xf32>
    tpu.vector_store %arg2[%c0_6, %c0_7], %14 {strides = array<i32>} : memref<128x128xf32, #tpu.memory_space<vmem>>, vector<128x128xf32>,
    return
  }
  func.func @transform_0(%arg0: i32) -> (i32, i32) {
    %c0_i32 = arith.constant 0 : i32
    %c0_i32_0 = arith.constant 0 : i32
    return %arg0, %c0_i32 : i32, i32
  }
  func.func @transform_1(%arg0: i32) -> (i32, i32) {
    %c0_i32 = arith.constant 0 : i32
    %c0_i32_0 = arith.constant 0 : i32
    %c0_i32_1 = arith.constant 0 : i32
    return %c0_i32, %c0_i32_0 : i32, i32
  }
}

</mosaic_0001>

<bundles_post_ra>
// kernel: tpu_custom_call.1
= control target key start
LH: loop header
LB: loop body
LE: loop exit
PB: predicated region body
PF: predicated region fallthrough
CT: control target
= control target key end

     0   :  { %6 = vsyncpa [#allocation3], 0  ;;  %s1075_s0 = inlined_call_operand.hbm [shape: f32[128,128], index: 0, kind: input, shape index: {}]   ;;  %s1076_s1 = inlined_call_operand.hbm [shape: f32[128,128], index: 1, kind: output, shape index: {}]  }
   0x1   :  { %7 = vsyncpa [#allocation4], 0  ;;  %s12_s8 = sshll.u32 %s1075_s0, 4  ;;  %s602_s9 = smov [#allocation2]   ;;  %s13_s8 = int_to_ptr.hbm [resolvable:$true] %s12_s8 }
   0x2   :  { %s14_s10 = sshll.u32 %s602_s9, 4  ;;  %s603_s11 = smov 128   ;;  %s15_s10 = int_to_ptr.vmem [resolvable:$true] %s14_s10 }
   0x3   :  { %s604_s12 = smov 8  }
   0x4   :  { %20 = dma.hbm_to_vmem [thread:$0]  %s13_s8, 2048, %s15_s10, [#allocation3], %s603_s11, %s603_s11, %s604_s12  }
   0x5   :  { %598 = dma.done.wait [#allocation3], 2048  }
   0x6   :  { %599 = vsyncadd [#allocation3], 4294965248  ;;  %v622_v0 = vld [vmem:[#allocation2] sm:$0xff]  ;;  %v624_v1 = vld [vmem:[#allocation2 + $0x10] sm:$0xff]  ;;  %s605_s0 = smov [#allocation5]   ;;  %s452_s16 = sshll.u32 %s1076_s1, 4  ;;  %s453_s16 = int_to_ptr.hbm [resolvable:$true] %s452_s16 }
   0x7   :  { %v41_v2 = vmul.f32 %v622_v0, %v622_v0  ;;  %v43_v3 = vmul.f32 %v624_v1, %v624_v1  ;;  %v630_v4 = vld [vmem:[#allocation2 + $0x20] sm:$0xff]  ;;  %v634_v6 = vld [vmem:[#allocation2 + $0x8] sm:$0xff]  ;;  %v636_v7 = vld [vmem:[#allocation2 + $0x18] sm:$0xff]  ;;  %s450_s13 = sshll.u32 %s605_s0, 4  ;;  %s451_s13 = int_to_ptr.vmem [resolvable:$true] %s450_s13 }
   0x8   :  { %v45_v5 = vmul.f32 %v630_v4, %v630_v4  ;;  %v638_v8 = vld [vmem:[#allocation2 + $0x28] sm:$0xff]  ;;  %v42_v9 = vmul.f32 %v634_v6, %v634_v6  ;;  %v44_v10 = vmul.f32 %v636_v7, %v636_v7  ;;  %v646_v12 = vld [vmem:[#allocation2 + $0x30] sm:$0xff]  ;;  %v648_v13 = vld [vmem:[#allocation2 + $0x38] sm:$0xff] }
   0x9   :  { %57 = vadd.xlane.f32.xlu0 %v41_v2  ;;  %61 = vadd.xlane.f32.xlu1 %v43_v3  ;;  %v46_v11 = vmul.f32 %v638_v8, %v638_v8  ;;  %v650_v14 = vld [vmem:[#allocation2 + $0x40] sm:$0xff]  ;;  %v47_v15 = vmul.f32 %v646_v12, %v646_v12  ;;  %v48_v16 = vmul.f32 %v648_v13, %v648_v13  ;;  %v658_v18 = vld [vmem:[#allocation2 + $0x48] sm:$0xff]  ;;  %v660_v19 = vld [vmem:[#allocation2 + $0x50] sm:$0xff] }
   0xa   :  { %65 = vadd.xlane.f32.xlu2 %v45_v5  ;;  %v49_v17 = vmul.f32 %v650_v14, %v650_v14  ;;  %v662_v20 = vld [vmem:[#allocation2 + $0x58] sm:$0xff]  ;;  %v50_v21 = vmul.f32 %v658_v18, %v658_v18  ;;  %v51_v22 = vmul.f32 %v660_v19, %v660_v19  ;;  %v670_v24 = vld [vmem:[#allocation2 + $0x60] sm:$0xff]  ;;  %v672_v25 = vld [vmem:[#allocation2 + $0x68] sm:$0xff] }
   0xb   :  { %v52_v23 = vmul.f32 %v662_v20, %v662_v20  ;;  %v674_v26 = vld [vmem:[#allocation2 + $0x70] sm:$0xff]  ;;  %v53_v27 = vmul.f32 %v670_v24, %v670_v24  ;;  %v54_v28 = vmul.f32 %v672_v25, %v672_v25  ;;  %v682_v30 = vld [vmem:[#allocation2 + $0x78] sm:$0xff] }
   0xc   :  { %v55_v29 = vmul.f32 %v674_v26, %v674_v26  ;;  %v56_v31 = vmul.f32 %v682_v30, %v682_v30 }
  0x11   :  { %59 = vadd.xlane.f32.xlu0 %v42_v9  ;;  %63 = vadd.xlane.f32.xlu1 %v44_v10 }
  0x12   :  { %67 = vadd.xlane.f32.xlu2 %v46_v11 }
  0x19   :  { %69 = vadd.xlane.f32.xlu0 %v47_v15  ;;  %71 = vadd.xlane.f32.xlu1 %v48_v16 }
  0x1a   :  { %73 = vadd.xlane.f32.xlu2 %v49_v17 }
  0x21   :  { %75 = vadd.xlane.f32.xlu0 %v50_v21  ;;  %77 = vadd.xlane.f32.xlu1 %v51_v22 }
  0x22   :  { %79 = vadd.xlane.f32.xlu2 %v52_v23 }
  0x29   :  { %81 = vadd.xlane.f32.xlu0 %v53_v27  ;;  %83 = vadd.xlane.f32.xlu1 %v54_v28 }
  0x2a   :  { %85 = vadd.xlane.f32.xlu2 %v55_v29 }
  0x31   :  { %87 = vadd.xlane.f32.xlu0 %v56_v31 }
  0x7c   :  { %v58_v32 = vpop.xlane.xlu0 %57  ;;  %v62_v33 = vpop.xlane.xlu1 %61 }
  0x7d   :  { %v89_v34 = vmax.f32 %v58_v32, 1e-24  ;;  %v91_v35 = vmax.f32 %v62_v33, 1e-24  ;;  %v66_v36 = vpop.xlane.xlu2 %65 }
  0x7e   :  { %v692_v48 = vmax.f32 %v66_v36, 1e-24 }
  0x7f   :  { %518 = vrsqrt.f32 %v89_v34  ;;  %vm111_vm1 = vweird.f32 %v89_v34  ;;  %vm131_vm5 = vweird.f32 %v91_v35 }
  0x80   :  { %520 = vrsqrt.f32 %v91_v35  ;;  %vm151_vm12 = vweird.f32 %v692_v48 }
  0x84   :  { %v60_v37 = vpop.xlane.xlu0 %59  ;;  %v64_v38 = vpop.xlane.xlu1 %63 }
  0x85   :  { %v519_v39 = vpop.eup %518  ;;  %v90_v40 = vmax.f32 %v60_v37, 1e-24  ;;  %v686_v41 = vmax.f32 %v64_v38, 1e-24  ;;  %v68_v42 = vpop.xlane.xlu2 %67 }
  0x86   :  { %v688_v43 = vpop.eup %520  ;;  %v106_v44 = vmul.f32 %v519_v39, %v89_v34  ;;  %vm112_vm0 = vweird.f32 %v519_v39  ;;  %v705_v62 = vmax.f32 %v68_v42, 1e-24 }
  0x87   :  { %522 = vrsqrt.f32 %v90_v40  ;;  %v126_v46 = vmul.f32 %v688_v43, %v91_v35  ;;  %vm113_vm2 = vmor %vm111_vm1, %vm112_vm0  ;;  %vm121_vm4 = vweird.f32 %v90_v40  ;;  %vm132_vm6 = vweird.f32 %v688_v43 }
  0x88   :  { %v107_v45 = vmul.f32 %v519_v39, %v106_v44  ;;  %524 = vrsqrt.f32 %v686_v41  ;;  %vm723_vm8 = vmor %vm131_vm5, %vm132_vm6  ;;  %vm141_vm9 = vweird.f32 %v686_v41  ;;  %vm161_vm15 = vweird.f32 %v705_v62 }
  0x89   :  { %v127_v53 = vmul.f32 %v688_v43, %v126_v46  ;;  %526 = vrsqrt.f32 %v692_v48 }
  0x8a   :  { %v108_v47 = vmul.f32 0.5, %v107_v45  ;;  %528 = vrsqrt.f32 %v705_v62 }
  0x8b   :  { %v128_v61 = vmul.f32 0.5, %v127_v53 }
  0x8c   :  { %v109_v49 = vsub.f32 1.5, %v108_v47  ;;  %v70_v50 = vpop.xlane.xlu0 %69  ;;  %v694_v51 = vpop.xlane.xlu1 %71 }
  0x8d   :  { %v523_v52 = vpop.eup %522  ;;  %v697_v54 = vpop.xlane.xlu2 %73  ;;  %v129_v11 = vsub.f32 1.5, %v128_v61  ;;  %v717_v22 = vmax.f32 %v70_v50, 1e-24 }
  0x8e   :  { %v110_v55 = vmul.f32 %v519_v39, %v109_v49  ;;  %v116_v56 = vmul.f32 %v523_v52, %v90_v40  ;;  %v700_v57 = vpop.eup %524  ;;  %vm122_vm3 = vweird.f32 %v523_v52 }
  0x8f   :  { %v136_v2 = vmul.f32 %v700_v57, %v686_v41  ;;  %v710_v3 = vpop.eup %526  ;;  %vm123_vm7 = vmor %vm121_vm4, %vm122_vm3  ;;  %v130_v23 = vmul.f32 %v688_v43, %v129_v11  ;;  %530 = vrsqrt.f32 %v717_v22  ;;  %vm142_vm10 = vweird.f32 %v700_v57 }
  0x90   :  { %v114_v58 = vsel %vm113_vm2, %v519_v39, %v110_v55  ;;  %v117_v59 = vmul.f32 %v523_v52, %v116_v56  ;;  %v146_v17 = vmul.f32 %v710_v3, %v692_v48  ;;  %v729_v32 = vpop.eup %528  ;;  %vm766_vm11 = vmor %vm141_vm9, %vm142_vm10  ;;  %vm152_vm13 = vweird.f32 %v710_v3 }
  0x91   :  { %v703_v60 = vmul.f32 %v114_v58, %v622_v0  ;;  %v137_v16 = vmul.f32 %v700_v57, %v136_v2  ;;  %v156_v42 = vmul.f32 %v729_v32, %v705_v62  ;;  %vm799_vm14 = vmor %vm151_vm12, %vm152_vm13  ;;  %vm162_vm0 = vweird.f32 %v729_v32 }
  0x92   :  { %v118_v63 = vmul.f32 0.5, %v117_v59  ;;  %v147_v33 = vmul.f32 %v710_v3, %v146_v17  ;;  %vm171_vm1 = vweird.f32 %v717_v22  ;;  %vm852_vm4 = vmor %vm161_vm15, %vm162_vm0 }
  0x93   :  { %281 = vxpose.xlu1.b32.start [1/16] %v703_v60, 128  ;;  %v138_v29 = vmul.f32 0.5, %v137_v16  ;;  %v157_v50 = vmul.f32 %v729_v32, %v156_v42 }
  0x94   :  { %v119_v5 = vsub.f32 1.5, %v118_v63  ;;  %v76_v9 = vpop.xlane.xlu0 %75  ;;  %v78_v10 = vpop.xlane.xlu1 %77  ;;  %v148_v45 = vmul.f32 0.5, %v147_v33 }
  0x95   :  { %v80_v0 = vpop.xlane.xlu2 %79  ;;  %v739_v37 = vmax.f32 %v78_v10, 1e-24  ;;  %v139_v40 = vsub.f32 1.5, %v138_v29  ;;  %v745_v44 = vmax.f32 %v76_v9, 1e-24  ;;  %v758_v47 = vpop.eup %530  ;;  %v158_v61 = vmul.f32 0.5, %v157_v50 }
  0x96   :  { %v120_v15 = vmul.f32 %v523_v52, %v119_v5  ;;  %v727_v31 = vmax.f32 %v80_v0, 1e-24  ;;  %v149_v53 = vsub.f32 1.5, %v148_v45  ;;  %v166_v48 = vmul.f32 %v758_v47, %v717_v22 }
  0x97   :  { %v140_v49 = vmul.f32 %v700_v57, %v139_v40  ;;  %v159_v16 = vsub.f32 1.5, %v158_v61  ;;  %vm172_vm2 = vweird.f32 %v758_v47 }
  0x98   :  { %v124_v21 = vsel %vm123_vm7, %v523_v52, %v120_v15  ;;  %532 = vrsqrt.f32 %v727_v31  ;;  %v764_v52 = vmax.f32 %v694_v51, 1e-24  ;;  %v150_v2 = vmul.f32 %v710_v3, %v149_v53 }
  0x99   :  { %v721_v27 = vmul.f32 %v124_v21, %v634_v6  ;;  %v134_v6 = vsel %vm723_vm8, %v688_v43, %v130_v23  ;;  %v160_v45 = vmul.f32 %v729_v32, %v159_v16 }
  0x9a   :  { %v755_v43 = vmul.f32 %v134_v6, %v624_v1  ;;  %v771_v1 = vmax.f32 %v697_v54, 1e-24  ;;  %v144_v54 = vsel %vm766_vm11, %v700_v57, %v140_v49  ;;  %v154_v23 = vsel %vm799_vm14, %v710_v3, %v150_v2 }
  0x9b   :  { %282 = vxpose.xlu1.b32.cont [2/16] %v721_v27, 128  ;;  %v807_v11 = vmul.f32 %v144_v54, %v636_v7  ;;  %v167_v7 = vmul.f32 %v758_v47, %v166_v48  ;;  %v835_v42 = vmul.f32 %v154_v23, %v630_v4  ;;  %vm221_vm14 = vweird.f32 %v727_v31 }
  0x9c   :  { %v82_v34 = vpop.xlane.xlu0 %81  ;;  %v84_v35 = vpop.xlane.xlu1 %83 }
  0x9d   :  { %v737_v36 = vmax.f32 %v82_v34, 1e-24  ;;  %v86_v38 = vpop.xlane.xlu2 %85  ;;  %v741_v39 = vmax.f32 %v84_v35, 1e-24  ;;  %v168_v41 = vmul.f32 0.5, %v167_v7 }
  0x9e   :  { %v749_v46 = vmax.f32 %v86_v38, 1e-24  ;;  %v775_v55 = vpop.eup %532 }
  0x9f   :  { %534 = vrsqrt.f32 %v737_v36  ;;  %v216_v0 = vmul.f32 %v775_v55, %v727_v31  ;;  %vm241_vm7 = vweird.f32 %v741_v39  ;;  %vm231_vm10 = vweird.f32 %v737_v36 }
  0xa0   :  { %536 = vrsqrt.f32 %v741_v39  ;;  %vm251_vm3 = vweird.f32 %v749_v46  ;;  %vm222_vm15 = vweird.f32 %v775_v55 }
  0xa1   :  { %538 = vrsqrt.f32 %v739_v37  ;;  %v217_v3 = vmul.f32 %v775_v55, %v216_v0 }
  0xa2   :  { %540 = vrsqrt.f32 %v745_v44 }
  0xa3   :  { %283 = vxpose.xlu1.b32.cont [3/16] %v755_v43, 128  ;;  %542 = vrsqrt.f32 %v749_v46 }
  0xa4   :  { %v88_v56 = vpop.xlane.xlu0 %87  ;;  %544 = vrsqrt.f32 %v764_v52 }
  0xa5   :  { %v777_v58 = vpop.eup %534  ;;  %v781_v51 = vmax.f32 %v88_v56, 1e-24  ;;  %546 = vrsqrt.f32 %v771_v1 }
  0xa6   :  { %v783_v59 = vpop.eup %536  ;;  %v226_v5 = vmul.f32 %v777_v58, %v737_v36  ;;  %vm232_vm12 = vweird.f32 %v777_v58 }
  0xa7   :  { %v789_v63 = vpop.eup %538  ;;  %548 = vrsqrt.f32 %v781_v51  ;;  %v236_v15 = vmul.f32 %v783_v59, %v741_v39  ;;  %vm261_vm6 = vweird.f32 %v781_v51  ;;  %vm242_vm8 = vweird.f32 %v783_v59 }
  0xa8   :  { %v797_v9 = vpop.eup %540  ;;  %v206_v17 = vmul.f32 %v789_v63, %v739_v37  ;;  %v227_v28 = vmul.f32 %v777_v58, %v226_v5  ;;  %v218_v5 = vmul.f32 0.5, %v217_v3  ;;  %vm881_vm13 = vmor %vm241_vm7, %vm242_vm8  ;;  %v169_v3 = vsub.f32 1.5, %v168_v41 }
  0xa9   :  { %v804_v57 = vpop.eup %542  ;;  %v237_v29 = vmul.f32 %v783_v59, %v236_v15  ;;  %v196_v34 = vmul.f32 %v797_v9, %v745_v44  ;;  %vm924_vm7 = vmor %vm221_vm14, %vm222_vm15 }
  0xaa   :  { %v246_v21 = vmul.f32 %v804_v57, %v749_v46  ;;  %v824_v33 = vpop.eup %544  ;;  %v207_v49 = vmul.f32 %v789_v63, %v206_v17  ;;  %v228_v56 = vmul.f32 0.5, %v227_v28  ;;  %vm252_vm5 = vweird.f32 %v804_v57  ;;  %vm938_vm8 = vmor %vm171_vm1, %vm172_vm2 }
  0xab   :  { %284 = vxpose.xlu1.b32.cont [4/16] %v807_v11, 128  ;;  %v829_v6 = vpop.eup %546  ;;  %v238_v38 = vmul.f32 0.5, %v237_v29  ;;  %v176_v53 = vmul.f32 %v824_v33, %v764_v52  ;;  %v197_v61 = vmul.f32 %v797_v9, %v196_v34  ;;  %vm871_vm11 = vmor %vm251_vm3, %vm252_vm5  ;;  %v219_v29 = vsub.f32 1.5, %v218_v5 }
  0xac   :  { %v247_v35 = vmul.f32 %v804_v57, %v246_v21  ;;  %v186_v4 = vmul.f32 %v829_v6, %v771_v1  ;;  %v208_v15 = vmul.f32 0.5, %v207_v49  ;;  %v229_v16 = vsub.f32 1.5, %v228_v56  ;;  %vm906_vm3 = vmor %vm231_vm10, %vm232_vm12 }
  0xad   :  { %v549_v40 = vpop.eup %548  ;;  %v239_v0 = vsub.f32 1.5, %v238_v38  ;;  %v164_v21 = vsel %vm852_vm4, %v729_v32, %v160_v45  ;;  %v198_v23 = vmul.f32 0.5, %v197_v61  ;;  %v177_v46 = vmul.f32 %v824_v33, %v176_v53 }
  0xae   :  { %v248_v50 = vmul.f32 0.5, %v247_v35  ;;  %v256_v54 = vmul.f32 %v549_v40, %v781_v51  ;;  %vm262_vm9 = vweird.f32 %v549_v40  ;;  %v187_v7 = vmul.f32 %v829_v6, %v186_v4 }
  0xaf   :  { %v240_v35 = vmul.f32 %v783_v59, %v239_v0  ;;  %vm891_vm0 = vmor %vm261_vm6, %vm262_vm9  ;;  %v230_v39 = vmul.f32 %v777_v58, %v229_v16  ;;  %v209_v45 = vsub.f32 1.5, %v208_v15  ;;  %v900_v41 = vmul.f32 %v164_v21, %v638_v8 }
  0xb0   :  { %v249_v2 = vsub.f32 1.5, %v248_v50  ;;  %v257_v10 = vmul.f32 %v549_v40, %v256_v54  ;;  %v188_v53 = vmul.f32 0.5, %v187_v7  ;;  %vm211_vm4 = vweird.f32 %v739_v37 }
  0xb1   :  { %vm212_vm5 = vweird.f32 %v789_v63  ;;  %v199_v56 = vsub.f32 1.5, %v198_v23  ;;  %v220_v54 = vmul.f32 %v775_v55, %v219_v29  ;;  %v170_v36 = vmul.f32 %v758_v47, %v169_v3 }
  0xb2   :  { %v258_v17 = vmul.f32 0.5, %v257_v10  ;;  %v250_v62 = vmul.f32 %v804_v57, %v249_v2  ;;  %vm201_vm6 = vweird.f32 %v745_v44  ;;  %vm202_vm9 = vweird.f32 %v797_v9  ;;  %vm952_vm10 = vmor %vm211_vm4, %vm212_vm5 }
  0xb3   :  { %285 = vxpose.xlu1.b32.cont [5/16] %v835_v42, 128  ;;  %v178_v31 = vmul.f32 0.5, %v177_v46  ;;  %v234_v2 = vsel %vm906_vm3, %v777_v58, %v230_v39  ;;  %v200_v58 = vmul.f32 %v797_v9, %v199_v56  ;;  %v189_v48 = vsub.f32 1.5, %v188_v53  ;;  %vm969_vm1 = vmor %vm201_vm6, %vm202_vm9 }
  0xb4   :  { %v259_v34 = vsub.f32 1.5, %v258_v17  ;;  %v254_v50 = vsel %vm871_vm11, %v804_v57, %v250_v62  ;;  %v244_v57 = vsel %vm881_vm13, %v783_v59, %v240_v35  ;;  %v224_v5 = vsel %vm924_vm7, %v775_v55, %v220_v54 }
  0xb5   :  { %v957_v22 = vmul.f32 %v244_v57, %v672_v25  ;;  %vm191_vm2 = vweird.f32 %v771_v1  ;;  %v975_v37 = vmul.f32 %v234_v2, %v670_v24  ;;  %v174_v55 = vsel %vm938_vm8, %v758_v47, %v170_v36 }
  0xb6   :  { %v260_v49 = vmul.f32 %v549_v40, %v259_v34  ;;  %vm192_vm11 = vweird.f32 %v829_v6  ;;  %v179_v44 = vsub.f32 1.5, %v178_v31  ;;  %v989_v24 = vmul.f32 %v224_v5, %v662_v20 }
  0xb7   :  { %v204_v47 = vsel %vm969_vm1, %v797_v9, %v200_v58  ;;  %v190_v0 = vmul.f32 %v829_v6, %v189_v48  ;;  %vm181_vm12 = vweird.f32 %v764_v52  ;;  %vm182_vm13 = vweird.f32 %v824_v33  ;;  %vm1006_vm14 = vmor %vm191_vm2, %vm192_vm11 }
  0xb8   :  { %v264_v8 = vsel %vm891_vm0, %v549_v40, %v260_v49  ;;  %v932_v40 = vmul.f32 %v254_v50, %v674_v26  ;;  %v271_v20 = vmul.f32 %v174_v55, %v646_v12  ;;  %v180_v52 = vmul.f32 %v824_v33, %v179_v44  ;;  %vm1019_vm15 = vmor %vm181_vm12, %vm182_vm13 }
  0xb9   :  { %v929_v4 = vmul.f32 %v264_v8, %v682_v30  ;;  %v210_v30 = vmul.f32 %v789_v63, %v209_v45  ;;  %v274_v12 = vmul.f32 %v204_v47, %v658_v18 }
  0xba   :  { %v184_v18 = vsel %vm1019_vm15, %v824_v33, %v180_v52 }
  0xbb   :  { %286 = vxpose.xlu1.b32.cont [6/16] %v900_v41, 128  ;;  %313 = vmatpush.msra.mxu0 %v929_v4  ;;  %v214_v10 = vsel %vm952_vm10, %v789_v63, %v210_v30 }
  0xbc   :  { %465 = vmatpush.msra.mxu1 %v929_v4  ;;  %466 = vmatpush.msra.mxu2 %v929_v4  ;;  %v1011_v9 = vmul.f32 %v214_v10, %v660_v19  ;;  %v194_v19 = vsel %vm1006_vm14, %v829_v6, %v190_v0  ;;  %v272_v6 = vmul.f32 %v184_v18, %v648_v13 }
  0xbd   :  { %467 = vmatpush.msra.mxu3 %v929_v4  ;;  %314 = vmatpush.msra.mxu0 %v932_v40  ;;  %v273_v15 = vmul.f32 %v194_v19, %v650_v14 }
  0xbe   :  { %468 = vmatpush.msra.mxu1 %v932_v40  ;;  %469 = vmatpush.msra.mxu2 %v932_v40 }
  0xbf   :  { %470 = vmatpush.msra.mxu3 %v932_v40  ;;  %315 = vmatpush.msra.mxu0 %v957_v22 }
  0xc0   :  { %471 = vmatpush.msra.mxu1 %v957_v22  ;;  %472 = vmatpush.msra.mxu2 %v957_v22 }
  0xc1   :  { %473 = vmatpush.msra.mxu3 %v957_v22  ;;  %316 = vmatpush.msra.mxu0 %v975_v37 }
  0xc2   :  { %474 = vmatpush.msra.mxu1 %v975_v37  ;;  %475 = vmatpush.msra.mxu2 %v975_v37 }
  0xc3   :  { %476 = vmatpush.msra.mxu3 %v975_v37  ;;  %287 = vxpose.xlu1.b32.cont [7/16] %v271_v20, 128 }
  0xc4   :  { %317 = vmatpush.msra.mxu0 %v989_v24  ;;  %477 = vmatpush.msra.mxu1 %v989_v24 }
  0xc5   :  { %478 = vmatpush.msra.mxu2 %v989_v24  ;;  %479 = vmatpush.msra.mxu3 %v989_v24 }
  0xc6   :  { %318 = vmatpush.msra.mxu0 %v1011_v9  ;;  %480 = vmatpush.msra.mxu1 %v1011_v9 }
  0xc7   :  { %481 = vmatpush.msra.mxu2 %v1011_v9  ;;  %482 = vmatpush.msra.mxu3 %v1011_v9 }
  0xc8   :  { %319 = vmatpush.msra.mxu0 %v274_v12  ;;  %483 = vmatpush.msra.mxu1 %v274_v12 }
  0xc9   :  { %484 = vmatpush.msra.mxu2 %v274_v12  ;;  %485 = vmatpush.msra.mxu3 %v274_v12 }
  0xca   :  { %320 = vmatpush.msra.mxu0 %v273_v15  ;;  %486 = vmatpush.msra.mxu1 %v273_v15 }
  0xcb   :  { %487 = vmatpush.msra.mxu2 %v273_v15  ;;  %488 = vmatpush.msra.mxu3 %v273_v15 }
  0xcc   :  { %288 = vxpose.xlu1.b32.cont [8/16] %v272_v6, 128  ;;  %321 = vmatpush.msra.mxu0 %v272_v6 }
  0xcd   :  { %489 = vmatpush.msra.mxu1 %v272_v6  ;;  %490 = vmatpush.msra.mxu2 %v272_v6 }
  0xce   :  { %491 = vmatpush.msra.mxu3 %v272_v6  ;;  %322 = vmatpush.msra.mxu0 %v271_v20 }
  0xcf   :  { %492 = vmatpush.msra.mxu1 %v271_v20  ;;  %493 = vmatpush.msra.mxu2 %v271_v20 }
  0xd0   :  { %494 = vmatpush.msra.mxu3 %v271_v20  ;;  %323 = vmatpush.msra.mxu0 %v900_v41 }
  0xd1   :  { %495 = vmatpush.msra.mxu1 %v900_v41  ;;  %496 = vmatpush.msra.mxu2 %v900_v41 }
  0xd2   :  { %497 = vmatpush.msra.mxu3 %v900_v41  ;;  %324 = vmatpush.msra.mxu0 %v835_v42 }
  0xd3   :  { %498 = vmatpush.msra.mxu1 %v835_v42  ;;  %499 = vmatpush.msra.mxu2 %v835_v42 }
  0xd4   :  { %500 = vmatpush.msra.mxu3 %v835_v42  ;;  %289 = vxpose.xlu1.b32.cont [9/16] %v273_v15, 128 }
  0xd5   :  { %325 = vmatpush.msra.mxu0 %v807_v11  ;;  %501 = vmatpush.msra.mxu1 %v807_v11 }
  0xd6   :  { %502 = vmatpush.msra.mxu2 %v807_v11  ;;  %503 = vmatpush.msra.mxu3 %v807_v11 }
  0xd7   :  { %326 = vmatpush.msra.mxu0 %v755_v43  ;;  %504 = vmatpush.msra.mxu1 %v755_v43 }
  0xd8   :  { %505 = vmatpush.msra.mxu2 %v755_v43  ;;  %506 = vmatpush.msra.mxu3 %v755_v43 }
  0xd9   :  { %327 = vmatpush.msra.mxu0 %v721_v27  ;;  %507 = vmatpush.msra.mxu1 %v721_v27 }
  0xda   :  { %508 = vmatpush.msra.mxu2 %v721_v27  ;;  %509 = vmatpush.msra.mxu3 %v721_v27 }
  0xdb   :  { %328 = vmatpush.msra.mxu0 %v703_v60  ;;  %510 = vmatpush.msra.mxu1 %v703_v60 }
  0xdc   :  { %511 = vmatpush.msra.mxu2 %v703_v60  ;;  %512 = vmatpush.msra.mxu3 %v703_v60 }
  0xdd   :  { %290 = vxpose.xlu1.b32.cont [10/16] %v274_v12, 128 }
  0xe5   :  { %291 = vxpose.xlu1.b32.cont [11/16] %v1011_v9, 128 }
  0xed   :  { %292 = vxpose.xlu1.b32.cont [12/16] %v989_v24, 128 }
  0xf5   :  { %293 = vxpose.xlu1.b32.cont [13/16] %v975_v37, 128 }
  0xfd   :  { %294 = vxpose.xlu1.b32.cont [14/16] %v957_v22, 128 }
 0x105   :  { %295 = vxpose.xlu1.b32.cont [15/16] %v932_v40, 128 }
 0x10d   :  { %296 = vxpose.xlu1.b32.end [16/16] %v929_v4, 128 }
 0x139   :  { %v297_v13 = vpop.trf.xlu1 }
 0x13a   :  { %329 = vmatmul.f32.vlgmr.msra.gmra.mxu0 %v297_v13 }
 0x141   :  { %v298_v14 = vpop.trf.xlu1 }
 0x142   :  { %332 = vmatmul.f32.gmra.mxu0 %v298_v14 }
 0x149   :  { %v299_v27 = vpop.trf.xlu1 }
 0x14a   :  { %335 = vmatmul.f32.gmra.mxu0 %v299_v27 }
 0x151   :  { %v300_v60 = vpop.trf.xlu1 }
 0x152   :  { %338 = vmatmul.f32.gmra.mxu0 %v300_v60 }
 0x159   :  { %v301_v43 = vpop.trf.xlu1 }
 0x15a   :  { %341 = vmatmul.f32.vlgmr.msra.gmra.mxu1 %v301_v43 }
 0x161   :  { %v302_v11 = vpop.trf.xlu1 }
 0x162   :  { %344 = vmatmul.f32.gmra.mxu1 %v302_v11 }
 0x169   :  { %v303_v33 = vpop.trf.xlu1 }
 0x16a   :  { %347 = vmatmul.f32.gmra.mxu1 %v303_v33 }
 0x171   :  { %v304_v42 = vpop.trf.xlu1 }
 0x172   :  { %350 = vmatmul.f32.gmra.mxu1 %v304_v42 }
 0x179   :  { %v305_v16 = vpop.trf.xlu1 }
 0x17a   :  { %353 = vmatmul.f32.vlgmr.msra.gmra.mxu2 %v305_v16 }
 0x181   :  { %v306_v17 = vpop.trf.xlu1 }
 0x182   :  { %356 = vmatmul.f32.gmra.mxu2 %v306_v17 }
 0x189   :  { %v307_v62 = vpop.trf.xlu1 }
 0x18a   :  { %359 = vmatmul.f32.gmra.mxu2 %v307_v62 }
 0x191   :  { %v308_v21 = vpop.trf.xlu1 }
 0x192   :  { %362 = vmatmul.f32.gmra.mxu2 %v308_v21 }
 0x199   :  { %v309_v23 = vpop.trf.xlu1 }
 0x19a   :  { %365 = vmatmul.f32.vlgmr.msra.gmra.mxu3 %v309_v23 }
 0x1a1   :  { %v310_v7 = vpop.trf.xlu1 }
 0x1a2   :  { %368 = vmatmul.f32.gmra.mxu3 %v310_v7 }
 0x1a9   :  { %v311_v28 = vpop.trf.xlu1 }
 0x1aa   :  { %371 = vmatmul.f32.gmra.mxu3 %v311_v28 }
 0x1b1   :  { %v312_v29 = vpop.trf.xlu1 }
 0x1b2   :  { %374 = vmatmul.f32.gmra.mxu3 %v312_v29 }
 0x1b7   :  { %v330_v34 = vpop.f32.mrf.mxu0 }
 0x1b8   :  { %430 = vst [vmem:[#allocation5] sm:$0xff] %v330_v34 }
 0x1bf   :  { %v333_v35 = vpop.f32.mrf.mxu0 }
 0x1c0   :  { %431 = vst [vmem:[#allocation5 + $0x8] sm:$0xff] %v333_v35 }
 0x1c7   :  { %v336_v32 = vpop.f32.mrf.mxu0 }
 0x1c8   :  { %432 = vst [vmem:[#allocation5 + $0x10] sm:$0xff] %v336_v32 }
 0x1cf   :  { %v339_v3 = vpop.f32.mrf.mxu0 }
 0x1d0   :  { %433 = vst [vmem:[#allocation5 + $0x18] sm:$0xff] %v339_v3 }
 0x1d7   :  { %v342_v46 = vpop.f32.mrf.mxu1 }
 0x1d8   :  { %434 = vst [vmem:[#allocation5 + $0x20] sm:$0xff] %v342_v46 }
 0x1df   :  { %v345_v38 = vpop.f32.mrf.mxu1 }
 0x1e0   :  { %435 = vst [vmem:[#allocation5 + $0x28] sm:$0xff] %v345_v38 }
 0x1e7   :  { %v348_v39 = vpop.f32.mrf.mxu1 }
 0x1e8   :  { %436 = vst [vmem:[#allocation5 + $0x30] sm:$0xff] %v348_v39 }
 0x1ef   :  { %v351_v45 = vpop.f32.mrf.mxu1 }
 0x1f0   :  { %437 = vst [vmem:[#allocation5 + $0x38] sm:$0xff] %v351_v45 }
 0x1fd   :  { %v354_v49 = vpop.f32.mrf.mxu2 }
 0x1fe   :  { %438 = vst [vmem:[#allocation5 + $0x40] sm:$0xff] %v354_v49 }
 0x205   :  { %v357_v50 = vpop.f32.mrf.mxu2 }
 0x206   :  { %439 = vst [vmem:[#allocation5 + $0x48] sm:$0xff] %v357_v50 }
 0x20d   :  { %v360_v41 = vpop.f32.mrf.mxu2 }
 0x20e   :  { %440 = vst [vmem:[#allocation5 + $0x50] sm:$0xff] %v360_v41 }
 0x215   :  { %v363_v53 = vpop.f32.mrf.mxu2 }
 0x216   :  { %441 = vst [vmem:[#allocation5 + $0x58] sm:$0xff] %v363_v53 }
 0x21d   :  { %v366_v51 = vpop.f32.mrf.mxu3 }
 0x21e   :  { %442 = vst [vmem:[#allocation5 + $0x60] sm:$0xff] %v366_v51 }
 0x225   :  { %v369_v56 = vpop.f32.mrf.mxu3 }
 0x226   :  { %443 = vst [vmem:[#allocation5 + $0x68] sm:$0xff] %v369_v56 }
 0x22d   :  { %v372_v54 = vpop.f32.mrf.mxu3 }
 0x22e   :  { %444 = vst [vmem:[#allocation5 + $0x70] sm:$0xff] %v372_v54 }
 0x235   :  { %v375_v8 = vpop.f32.mrf.mxu3 }
 0x236   :  { %445 = vst [vmem:[#allocation5 + $0x78] sm:$0xff] %v375_v8 }
 0x237   :  { %458 = dma.vmem_to_hbm [thread:$0]  %s451_s13, 2048, %s453_s16, [#allocation4], %s603_s11, %s603_s11, %s604_s12  }
 0x238   :  { %600 = dma.done.wait [#allocation4], 2048  }
 0x239   :  { %601 = vsyncadd [#allocation4], 4294965248 }
 0x23a   :  { %463 = vsyncpa [#allocation3], 1 }
 0x23b   :  { %464 = vsyncpa [#allocation4], 1 }

</bundles_post_ra>
